<compile_context>
chip_gen: v7x
topology: tpu7x:2x2x1
jax: 0.10.0
libtpu: 0.0.40
codegen_flags: <defaults>
</compile_context>

<pallas_src>
from functools import partial

import jax
import jax.numpy as jnp
from jax.experimental import pallas as pl
from jax.experimental.pallas import tpu as pltpu


# ----------------------------------------------------------------------------
# Kernel: per-(batch, spatial-tile) dynamic linear.
#   paramT = V^T @ U_b^T              (out_dim, in_dim+1)   -- tiny, recomputed
#   y_tile = paramT[:, :in_dim] @ x_tile (+ bias column)     -- the real work
# ----------------------------------------------------------------------------
def _dyn_linear_kernel(vt_ref, ut_ref, x_ref, y_ref, *, in_dim, use_bias):
    # vt_ref: (out_dim, k)        resident (V pre-transposed)
    # ut_ref: (1, k, in_dim+1)    per-batch (U pre-transposed), resident over HW tiles
    # x_ref:  (1, in_dim, T_HW)   streamed spatial tile of x (lane-dense)
    # y_ref:  (1, out_dim, T_HW)
    param_t = jnp.dot(vt_ref[...], ut_ref[0],
                      preferred_element_type=jnp.float32)      # (out_dim, in_dim+1)
    w_t = param_t[:, :in_dim]                                   # (out_dim, in_dim)
    y = jnp.dot(w_t.astype(x_ref.dtype), x_ref[0],
                preferred_element_type=jnp.float32)             # (out_dim, T_HW)
    if use_bias:
        y = y + param_t[:, in_dim:]                             # (out_dim, 1) broadcast over HW
    y_ref[0] = y.astype(y_ref.dtype)


def _spatial_tile(hw, in_dim, out_dim, x_itemsize,
                  budget_bytes=8 << 20, max_tile=2048):
    """Pick a lane-dense spatial tile (multiple of 128) bounded by a VMEM budget
    for the double-buffered x/y tiles, and the padded spatial extent."""
    lane = 128
    hw_128 = ((hw + lane - 1) // lane) * lane
    per_col = 2 * (in_dim * x_itemsize + out_dim * 4)   # double-buffered x + y, per column
    t = budget_bytes // max(per_col, 1)
    t = max(lane, (t // lane) * lane)
    t = min(t, max_tile, hw_128)
    hw_p = ((hw + t - 1) // t) * t
    return int(t), int(hw_p)


def prepare_params(dec_w, dec_b, V):
    """One-time parameter layout prep (do NOT call per forward):
       dec_w ((in_dim+1)*k, mu_dim)  ->  dec_wT (mu_dim, (in_dim+1)*k)
       V     (k, out_dim)            ->  Vt     (out_dim, k)
    """
    return jnp.asarray(dec_w).T, jnp.asarray(dec_b), jnp.asarray(V).T


def dynamic_linear(x, mu, dec_wT, dec_b, Vt, *, in_dim, out_dim, k,
                   use_bias=True, stream_dtype=None):
    """Pallas implementation of DynamicLinear.forward(x, mu).

    x:      (B, in_dim, H, W)
    mu:     (B, mu_dim)
    dec_wT: (mu_dim, (in_dim+1)*k)   -- decoder weight, pre-transposed
    dec_b:  ((in_dim+1)*k,)
    Vt:     (out_dim, k)             -- V, pre-transposed
    stream_dtype: optional dtype (e.g. jnp.bfloat16) to stream x through the
                  kernel; accumulation stays f32, output keeps x.dtype.
    returns (B, out_dim, H, W)
    """
    B, C, H, W = x.shape
    assert C == in_dim, f"x channel dim {C} != in_dim {in_dim}"
    N = in_dim + 1
    HW = H * W
    out_dtype = x.dtype

    # --- tiny per-batch param decode (kept in plain XLA: microseconds of work,
    #     avoids an extra pallas_call dispatch + HBM round trip) ---
    u = jnp.dot(mu, dec_wT, preferred_element_type=jnp.float32) + dec_b   # (B, N*k)
    u_t = jnp.swapaxes(u.reshape(B, N, k), 1, 2)                          # (B, k, N)

    # --- lane-dense spatial layout: flatten, (optionally) cast, pad to tile ---
    x_dtype = jnp.dtype(stream_dtype) if stream_dtype is not None else x.dtype
    x_flat = x.reshape(B, in_dim, HW).astype(x_dtype)
    t_hw, hw_p = _spatial_tile(HW, in_dim, out_dim, jnp.dtype(x_dtype).itemsize)
    if hw_p != HW:
        x_flat = jnp.pad(x_flat, ((0, 0), (0, 0), (0, hw_p - HW)))

    grid = (B, hw_p // t_hw)
    kernel = partial(_dyn_linear_kernel, in_dim=in_dim, use_bias=use_bias)

    y_flat = pl.pallas_call(
        kernel,
        out_shape=jax.ShapeDtypeStruct((B, out_dim, hw_p), out_dtype),
        grid=grid,
        in_specs=[
            pl.BlockSpec((out_dim, k), lambda b, t: (0, 0)),           # Vt: resident
            pl.BlockSpec((1, k, N), lambda b, t: (b, 0, 0)),           # Ut: per-batch, resident over t
            pl.BlockSpec((1, in_dim, t_hw), lambda b, t: (b, 0, t)),   # x: streamed spatial tiles
        ],
        out_specs=pl.BlockSpec((1, out_dim, t_hw), lambda b, t: (b, 0, t)),
        compiler_params=pltpu.CompilerParams(
            # each (b, t) writes a distinct output block -> both axes parallel
            # (lets v7x shard across both TensorCores; harmless on v5e/v6e).
            dimension_semantics=("parallel", "parallel"),
            # explicit limit, safe on v7x's 64 MiB VMEM; tiles are capped ~8 MiB.
            vmem_limit_bytes=32 * 1024 * 1024,
        ),
    )(Vt, u_t, x_flat)

    return y_flat[:, :, :HW].reshape(B, out_dim, H, W)


# ----------------------------------------------------------------------------
# Pure-JAX reference (mirrors the PyTorch forward exactly, PyTorch param layout)
# ----------------------------------------------------------------------------
def dynamic_linear_ref(x, mu, dec_w, dec_b, V, *, in_dim, out_dim, k, use_bias=True):
    B = mu.shape[0]
    U = (mu @ dec_w.T + dec_b).reshape(B, in_dim + 1, k)
    param = jnp.einsum("bik,kj->bij", U, V)               # (B, in_dim+1, out_dim)
    weight = param[:, :-1, :]                             # (B, in_dim, out_dim)
    bias = param[:, -1, :]                                # (B, out_dim)
    y = jnp.einsum("bdhw,bde->behw", x, weight)
    if use_bias:
        y = y + bias[:, :, None, None]
    return y


if __name__ == "__main__":
    B, in_dim, out_dim, mu_dim, k = 2, 4, 8, 32, 30
    H = W = 16

    key = jax.random.PRNGKey(0)
    kx, kmu, kw, kb, kv, kx2 = jax.random.split(key, 6)

    x = jax.random.normal(kx, (B, in_dim, H, W), dtype=jnp.float32)
    mu = jax.random.normal(kmu, (B, mu_dim), dtype=jnp.float32)

    # Parameters in PyTorch layout.  NOTE: PyTorch inits V to zeros (forward
    # would be trivially zero); small random values keep the test non-degenerate.
    dec_w = 0.05 * jax.random.normal(kw, ((in_dim + 1) * k, mu_dim), dtype=jnp.float32)
    dec_b = 0.05 * jax.random.normal(kb, ((in_dim + 1) * k,), dtype=jnp.float32)
    V = 0.05 * jax.random.normal(kv, (k, out_dim), dtype=jnp.float32)

    # One-time layout prep (not per forward).
    dec_wT, dec_b_p, Vt = prepare_params(dec_w, dec_b, V)

    # 1) f32 path, bias=True (module default).
    y = dynamic_linear(x, mu, dec_wT, dec_b_p, Vt,
                       in_dim=in_dim, out_dim=out_dim, k=k, use_bias=True)
    y = jax.block_until_ready(y)
    y_ref = dynamic_linear_ref(x, mu, dec_w, dec_b, V,
                               in_dim=in_dim, out_dim=out_dim, k=k, use_bias=True)
    assert y.shape == (B, out_dim, H, W)
    assert jnp.allclose(y, y_ref, atol=5e-4, rtol=5e-4), "f32 mismatch vs reference"

    # 2) Non-128-multiple spatial size (exercises lane padding) + bias=False branch.
    H2 = W2 = 10
    x2 = jax.random.normal(kx2, (B, in_dim, H2, W2), dtype=jnp.float32)
    y2 = dynamic_linear(x2, mu, dec_wT, dec_b_p, Vt,
                        in_dim=in_dim, out_dim=out_dim, k=k, use_bias=False)
    y2 = jax.block_until_ready(y2)
    y2_ref = dynamic_linear_ref(x2, mu, dec_w, dec_b, V,
                                in_dim=in_dim, out_dim=out_dim, k=k, use_bias=False)
    assert y2.shape == (B, out_dim, H2, W2)
    assert jnp.allclose(y2, y2_ref, atol=5e-4, rtol=5e-4), "padded/no-bias mismatch vs reference"

    # 3) bf16-streamed x (halves HBM read traffic; f32 accumulation in-kernel).
    y3 = dynamic_linear(x, mu, dec_wT, dec_b_p, Vt,
                        in_dim=in_dim, out_dim=out_dim, k=k, use_bias=True,
                        stream_dtype=jnp.bfloat16)
    y3 = jax.block_until_ready(y3)
    assert jnp.allclose(y3, y_ref, atol=1e-2, rtol=1e-1), "bf16 streaming mismatch vs reference"

    print("KERNEL_OK")
</pallas_src>

<mosaic_0001>
module attributes {stable_mosaic.version = 11 : i64} {
  func.func @_dyn_linear_kernel(%arg0: i32, %arg1: i32, %arg2: memref<8x30xf32, #tpu.memory_space<vmem>>, %arg3: memref<1x30x5xf32, #tpu.memory_space<vmem>>, %arg4: memref<1x4x256xf32, #tpu.memory_space<vmem>>, %arg5: memref<1x8x256xf32, #tpu.memory_space<vmem>>) attributes {dimension_semantics = [#tpu.dimension_semantics<parallel>, #tpu.dimension_semantics<parallel>], iteration_bounds = array<i64: 2, 1>, scalar_prefetch = 0 : i64, scratch_operands = 0 : i64, tpu.core_type = #tpu.core_type<tc>, window_params = [{pipeline_mode = #tpu.pipeline_mode<synchronous>, transform_indices = @transform_0, window_bounds = array<i64: 8, 30>}, {transform_indices = @transform_1, window_bounds = array<i64: 1, 30, 5>}, {transform_indices = @transform_2, window_bounds = array<i64: 1, 4, 256>}, {transform_indices = @transform_3, window_bounds = array<i64: 1, 8, 256>}]} {
    %c0 = arith.constant 0 : index
    %c0_0 = arith.constant 0 : index
    %0 = vector.load %arg2[%c0, %c0_0] : memref<8x30xf32, #tpu.memory_space<vmem>>, vector<8x30xf32>
    %c0_1 = arith.constant 0 : index
    %c0_2 = arith.constant 0 : index
    %c0_3 = arith.constant 0 : index
    %1 = vector.load %arg3[%c0_1, %c0_2, %c0_3] : memref<1x30x5xf32, #tpu.memory_space<vmem>>, vector<1x30x5xf32>
    %2 = vector.shape_cast %1 : vector<1x30x5xf32> to vector<30x5xf32>
    %cst = arith.constant dense<0.000000e+00> : vector<8x5xf32>
    %3 = tpu.matmul %0, %2, %cst {dimension_numbers = #tpu.dot_dimension_numbers<[1], [0], [0], [1], [0, 0, 1, 1], [], []>} : vector<8x30xf32>, vector<30x5xf32>, vector<8x5xf32> -> vector<8x5xf32>
    %4 = vector.extract_strided_slice %3 {offsets = [0, 0], sizes = [8, 4], strides = [1, 1]} : vector<8x5xf32> to vector<8x4xf32>
    %c0_4 = arith.constant 0 : index
    %c0_5 = arith.constant 0 : index
    %c0_6 = arith.constant 0 : index
    %5 = vector.load %arg4[%c0_4, %c0_5, %c0_6] : memref<1x4x256xf32, #tpu.memory_space<vmem>>, vector<1x4x256xf32>
    %6 = vector.shape_cast %5 : vector<1x4x256xf32> to vector<4x256xf32>
    %cst_7 = arith.constant dense<0.000000e+00> : vector<8x256xf32>
    %7 = tpu.matmul %4, %6, %cst_7 {dimension_numbers = #tpu.dot_dimension_numbers<[1], [0], [0], [1], [0, 0, 1, 1], [], []>} : vector<8x4xf32>, vector<4x256xf32>, vector<8x256xf32> -> vector<8x256xf32>
    %8 = vector.extract_strided_slice %3 {offsets = [0, 4], sizes = [8, 1], strides = [1, 1]} : vector<8x5xf32> to vector<8x1xf32>
    %9 = vector.broadcast %8 : vector<8x1xf32> to vector<8x256xf32>
    %10 = arith.addf %7, %9 : vector<8x256xf32>
    %c0_8 = arith.constant 0 : index
    %c0_9 = arith.constant 0 : index
    %c0_10 = arith.constant 0 : index
    %11 = vector.load %arg5[%c0_8, %c0_9, %c0_10] : memref<1x8x256xf32, #tpu.memory_space<vmem>>, vector<1x8x256xf32>
    %12 = vector.shape_cast %11 : vector<1x8x256xf32> to vector<8x256xf32>
    %13 = vector.shape_cast %10 : vector<8x256xf32> to vector<1x8x256xf32>
    tpu.vector_store %arg5[%c0_8, %c0_9, %c0_10], %13 {strides = array<i32>} : memref<1x8x256xf32, #tpu.memory_space<vmem>>, vector<1x8x256xf32>,
    return
  }
  func.func @transform_0(%arg0: i32, %arg1: i32) -> (i32, i32) {
    %c0_i32 = arith.constant 0 : i32
    %c0_i32_0 = arith.constant 0 : i32
    %c0_i32_1 = arith.constant 0 : i32
    return %c0_i32, %c0_i32_0 : i32, i32
  }
  func.func @transform_1(%arg0: i32, %arg1: i32) -> (i32, i32, i32) {
    %c0_i32 = arith.constant 0 : i32
    %c0_i32_0 = arith.constant 0 : i32
    %c0_i32_1 = arith.constant 0 : i32
    return %arg0, %c0_i32, %c0_i32_0 : i32, i32, i32
  }
  func.func @transform_2(%arg0: i32, %arg1: i32) -> (i32, i32, i32) {
    %c0_i32 = arith.constant 0 : i32
    %c0_i32_0 = arith.constant 0 : i32
    return %arg0, %c0_i32, %arg1 : i32, i32, i32
  }
  func.func @transform_3(%arg0: i32, %arg1: i32) -> (i32, i32, i32) {
    %c0_i32 = arith.constant 0 : i32
    %c0_i32_0 = arith.constant 0 : i32
    return %arg0, %c0_i32, %arg1 : i32, i32, i32
  }
}

</mosaic_0001>

<bundles_post_ra>
// kernel: tpu_custom_call.1
= control target key start
LH: loop header
LB: loop body
LE: loop exit
PB: predicated region body
PF: predicated region fallthrough
CT: control target
= control target key end

     0   :  { %8 = vsyncpa [#allocation3], 0  ;;  %s829_s0 = inlined_call_operand.vmem [shape: f32[8,30], index: 0, kind: input, shape index: {}]   ;;  %s830_s1 = inlined_call_operand.vmem [shape: f32[2,30,5], index: 1, kind: input, shape index: {}]   ;;  %s831_s2 = inlined_call_operand.vmem [shape: f32[2,4,256], index: 2, kind: input, shape index: {}]   ;;  %s832_s3 = inlined_call_operand.hbm [shape: f32[2,8,256], index: 3, kind: output, shape index: {}]  }
   0x1   :  { %10 = vsyncpa [#allocation3 + $0x1], 0  ;;  %s711_s12 = smov 0   ;;  %s713_s13 = smov 0  }
   0x2   :  { %s715_s14 = smov 0   ;;  %s717_s15 = smov 0  }
   0x3   :  { %s719_s16 = smov 0   ;;  %s721_s17 = smov 0  }
   0x4 LB: > { %s497_s18 = sadd.s32 4294967295, %s683_s17   ;;  %s498_s19 = sadd.s32 4294967294, %s683_s17   ;;  %s683_s17 = sphi %s721_s17, %s16_s17   ;;  %s679_s16 = sphi %s719_s16, %s839_s16   ;;  %s675_s15 = sphi %s717_s15, %s838_s15   ;;  %s671_s14 = sphi %s715_s14, %s837_s14   ;;  %s667_s13 = sphi %s713_s13, %s836_s13   ;;  %s663_s12 = sphi %s711_s12, %s835_s12  }
   0x5   : > { %s28_s20 = sadd.s32 1, %s679_s16  ;;  %s112_s21 = sadd.s32 1, %s671_s14 }
   0x6   : > { %p30_p0 = scmp.ge.s32.totalorder %s28_s20, 2  ;;  %p122_p1 = scmp.ne.s32.totalorder %s671_s14, %s667_s13 }
   0x7   : > { %p123_p2 = scmp.eq.s32.totalorder %s497_s18, 1  ;;  %p128_p3 = scmp.ne.s32.totalorder %s667_s13, %s663_s12 }
   0x8   : > { %s841_s20 = smov (%p30_p0, %s28_s20), 0  ;;  %p129_p5 = scmp.eq.s32.totalorder %s498_s19, 1 }
   0x9   : > { %p751_p4 = por %p123_p2, %p122_p1  ;;  %s107_s23 = ssub.s32 %s679_s16, %s841_s20 }
   0xa   : > { %p501_p6 = scmp.ge.s32.totalorder %s683_s17, 1  ;;  %p110_p7 = scmp.eq.s32.totalorder %s107_s23, 0 }
   0xb   : > { %p758_p8 = por %p129_p5, %p128_p3  ;;  %p171_p9 = scmp.lt.s32.totalorder %s683_s17, 3 }
   0xc   : > { %s764_s25 = scalar_select %p110_p7, %s671_s14, %s112_s21  }
   0xd   : > { %p172_p10 = pnand %p501_p6, %p171_p9 }
   0xe   : > { %p204_p11 = scmp.lt.s32.totalorder (!%p172_p10), %s675_s15, 1  ;;  %v685_v0 = vmov (!%p172_p10), 0.0|0.0   ;;  %vm686_vm0 = vmmov (!%p172_p10), 0   ;;  %v687_v1 = vmov (!%p172_p10), 0.0   ;;  %v688_v2 = vmov (!%p172_p10), 4   ;;  %v220_v11 = vld [vmem:[%s829_s0] sm:$0xff] (!%p172_p10) }
   0xf   : > { %175 = sbr.rel (%p172_p10) target bundleno = 477 (0x1dd), region = 32  ;;  %536 = vmatprep.subr.bf16.mxu0 (!%p172_p10), %v685_v0  ;;  %533 = vmatprep.mubr.msk.f32.mxu0 (!%p172_p10), %vm686_vm0, %v687_v1  ;;  %vm229_vm1 = vcmask (!%p172_p10), 1045504   ;;  %vm314_vm2 = vcmask (!%p172_p10), 1043456   ;;  %vm689_vm3 = vmmov (!%p172_p10), 1   ;;  %vm225_vm5 = vcmask (!%p172_p10), 244736   ;;  %s201_s10 = sand.u32 (!%p172_p10), 1, %s667_s13  }
  0x10   : > { %603 = vset.pattern.permute.xlu0 (!%p172_p10), %v688_v2  ;;  %383 = vmatprep.mubr.f32.mxu1 (!%p172_p10), %v687_v1  ;;  %vm541_vm4 = vmpackc.low (!%p172_p10), %vm229_vm1, %vm689_vm3  ;;  %vm311_vm6 = vcmask (!%p172_p10), 31744   ;;  %s502_s11 = sshll.u32 (!%p172_p10), %s201_s10, 4  ;;  %s519_s18 = sshll.u32 (!%p172_p10), %s675_s15, 8 }
  0x11   : > { %s203_s19 = scalar_lea.vmem (!%p172_p10), [#allocation2], %s502_s11  ;;  %s690_s29 = smov (!%p172_p10), [#allocation2]  }
  0x12   : > { %s409_s21 = sshll.u32 (!%p172_p10), %s203_s19, 4  ;;  %s609_s30 = sshll.u32 (!%p172_p10), %s690_s29, 4  ;;  %s784_s21 = int_to_ptr.vmem [resolvable:$true] %s409_s21  ;;  %s610_s30 = int_to_ptr.vmem [resolvable:$false] %s609_s30 }
  0x13   : > { %p612_p1 = scmp.lt.s32.totalorder (!%p172_p10), %s784_s21, %s610_s30 }
  0x16   : > { %s205_s26 = scalar_select %p204_p11, %s675_s15, 1 }
  0x17   : > { %s393_s15 = scalar_lea.sflag [#allocation3], %s201_s10 }
  0x18   : > { %s517_s27 = sshll.u32 %s205_s26, 5  ;;  %s518_s28 = sshll.u32 %s205_s26, 3 }
  0x19   : > { %s208_s4 = scalar_lea.vmem %s830_s1, %s517_s27  ;;  %s217_s7 = scalar_lea.vmem %s831_s2, %s518_s28 }
  0x1a   : > { %v221_v3 = vld [vmem:[%s208_s4] sm:$0xff]  ;;  %v222_v4 = vld [vmem:[%s208_s4 + $0x8] sm:$0xff]  ;;  %v223_v5 = vld [vmem:[%s208_s4 + $0x10] sm:$0xff]  ;;  %s782_s27 = scalar_lea.hbm %s832_s3, %s519_s18  ;;  %s605_s28 = scalar_lea.vmem %s784_s21, 256 }
  0x1b   : > { %v537_v6 = vpack.c.bf16 %v222_v4, %v221_v3  ;;  %v224_v7 = vld [vmem:[%s208_s4 + $0x18] sm:$0x3f]  ;;  %v303_v8 = vld [vmem:[%s217_s7] sm:$0xff]  ;;  %p606_p12 = scmp.ne.s32.totalorder %s784_s21, %s605_s28  ;;  %s611_s4 = scalar_lea.vmem %s610_s30, 512 }
  0x1c   : > { %v310_v9 = vcombine.high %v303_v8, %v303_v8  ;;  %v540_v10 = vpack.c.bf16 %v224_v7, %v223_v5  ;;  %p613_p2 = scmp.lt.s32.totalorder %s611_s4, %s605_s28 }
  0x1d   : > { %538 = vmatpush3.bf16.msra.mxu0 %v537_v6  ;;  %p607_p13 = pnand %p606_p12, %p751_p4 }
  0x1e   : > { %539 = vmatprep.subr.bf16.mxu0 %v685_v0  ;;  %509 = vmatprep.subr.msk.mxu1 %vm314_vm2, %v310_v9  ;;  %p614_p3 = por %p613_p2, %p612_p1 }
  0x1f   : > { %510 = vmatpush1.msk.msra.mxu1 %vm314_vm2, %v303_v8  ;;  %p608_p0 = pneg %p607_p13 }
  0x21   : > { %542 = vmatpush3.bf16.msk.msra.mxu0 %vm541_vm4, %v540_v10  ;;  %p615_p5 = pnand %p614_p3, %p608_p0 }
  0x24   : > { %534 = vmatmul.mubr.msk.f32.vlgmr.msra.gmra.mrb[0].mxu0 %vm225_vm5, %v220_v11 }
  0xf7   : > { %v299_v12 = vpop.f32.mrb[0].mxu0 }
  0xf8   : > { %306 = vperm.xlu0 %603, %v299_v12   ;;  %v535_v13 = vpop.f32.mrb[1].mxu0  ;;  %511 = vmatmul.mubr.msk.f32.vlgmr.msra.gmra.mrb[0].mxu1 %vm311_vm6, %v299_v12 }
 0x177   : > { %v307_v14 = vpop.permute.xlu0 %306 }
 0x1cb   : > { %v385_v15 = vpop.f32.mrb[0].mxu1 }
 0x1cc   : > { %v386_v16 = vadd.f32 %v385_v15, %v307_v14  ;;  %v387_v17 = vpop.f32.mrb[1].mxu1 }
 0x1cd   : > { %v388_v18 = vadd.f32 %v387_v17, %v307_v14 }
 0x1ce   : > { %390 = vst [vmem:[%s203_s19] sm:$0xff] %v386_v16 }
 0x1cf   : > { %391 = vst [vmem:[%s203_s19 + $0x8] sm:$0xff] %v388_v18 }
 0x1d0   : > { %618 = shalt.err (!%p615_p5)
}
 0x1d1   : > { %s619_s5 = scalar_lea.hbm %s782_s27, 256  ;;  %s623_s8 = scalar_lea.hbm %s832_s3, 512 }
 0x1d2   : > { %p620_p6 = scmp.ne.s32.totalorder %s782_s27, %s619_s5  ;;  %p624_p10 = scmp.lt.u32.totalorder %s782_s27, %s832_s3 }
 0x1d3   : > { %p625_p11 = scmp.lt.u32.totalorder %s623_s8, %s619_s5  ;;  %p627_p13 = scmp.lt.u32.totalorder %s619_s5, %s782_s27 }
 0x1d4   : > { %p621_p7 = pnand %p620_p6, %p751_p4 }
 0x1d5   : > { %p626_p12 = por %p625_p11, %p624_p10 }
 0x1d6   : > { %p622_p9 = pneg %p621_p7 }
 0x1d7   : > { %p628_p0 = por %p627_p13, %p626_p12 }
 0x1d9   : > { %p629_p1 = pnand %p628_p0, %p622_p9 }
 0x1db   : > { %632 = shalt.err (!%p629_p1)
}
 0x1dc   : > { %543 = dma.vmem_to_hbm [thread:$0]  (%p751_p4), %s784_s21, 256, %s782_s27, %s393_s15  }
 0x1dd PF: > { %p549_p2 = scmp.ge.s32.totalorder %s683_s17, 2  ;;  %s421_s11 = sand.u32 1, %s663_s12  }
 0x1de   : > { %s422_s18 = scalar_lea.sflag [#allocation3], %s421_s11 }
 0x1df   : > { %p546_p3 = pnand %p549_p2, %p758_p8 }
 0x1e1   : > { %658 = dma.done.wait (!%p546_p3), %s422_s18, 256  }
 0x1e2   : > { %660 = vsyncadd (!%p546_p3), %s422_s18, 4294967040  ;;  %s16_s17 = sadd.s32 1, %s683_s17   ;;  %s835_s12 = smov %s667_s13 }
 0x1e3   : > { %p13_p5 = scmp.ge.s32.totalorder %s16_s17, 4   ;;  %s836_s13 = smov %s671_s14 }
 0x1e4   : > { %s837_s14 = smov %s764_s25  ;;  %s838_s15 = smov %s679_s16 }
 0x1e5   : > { %s839_s16 = smov %s841_s20  ;;  %15 = sbr.rel (!%p13_p5) target bundleno = 4 (0x4), region = 70 }
 0x1ec   :  { %427 = vsyncpa [#allocation3], 1 }
 0x1ed   :  { %429 = vsyncpa [#allocation3 + $0x1], 1 }

</bundles_post_ra>
